<compile_context>
chip_gen: v7x
topology: tpu7x:2x2x1
jax: 0.10.0
libtpu: 0.0.40
codegen_flags: <defaults>
</compile_context>

<pallas_src>
from math import prod

import jax
import jax.numpy as jnp
from jax.experimental import pallas as pl
from jax.experimental.pallas import tpu as pltpu


def _round_up(x: int, m: int) -> int:
    return ((x + m - 1) // m) * m


def _scoped_vmem_cap() -> int:
    """64 MiB scoped cap on 128-MiB-VMEM chips (v5e/v6e), 32 MiB on v7x."""
    try:
        info = pltpu.get_tpu_info()
        phys = int(getattr(info, "vmem_capacity_bytes", 64 * 1024 * 1024))
    except Exception:
        phys = 64 * 1024 * 1024
    return 64 * 1024 * 1024 if phys >= 100 * 1024 * 1024 else 32 * 1024 * 1024


# ----------------------------- Pallas kernel ------------------------------
def _dendritic_fanout_kernel(a_ref, x_ref, wa_ref, wi_ref, tcb_ref, o_ref):
    """One (TM, TN) output tile:
       softplus(a @ Wa.T + x @ Wi.T + (t_contrib + bias)[row % T])."""
    acc = jnp.dot(a_ref[...], wa_ref[...], preferred_element_type=jnp.float32)
    acc = acc + jnp.dot(x_ref[...], wi_ref[...], preferred_element_type=jnp.float32)

    # Time-embedding (+ folded bias) contribution, broadcast over leading batch
    # dims.  Global row r has schedule index r % T; select the row of the tiny
    # resident tcb table via a one-hot MXU matmul (K = T, MXU has large slack).
    tm = a_ref.shape[0]
    t = tcb_ref.shape[0]
    i = pl.program_id(0)
    row = i * tm + jax.lax.broadcasted_iota(jnp.int32, (tm, t), 0)
    col = jax.lax.broadcasted_iota(jnp.int32, (tm, t), 1)
    onehot = (row % t == col).astype(jnp.float32)                       # [TM, T]
    acc = acc + jnp.dot(onehot, tcb_ref[...], preferred_element_type=jnp.float32)

    # numerically-stable softplus (matches torch.nn.functional.softplus)
    sp = jnp.maximum(acc, 0.0) + jnp.log1p(jnp.exp(-jnp.abs(acc)))
    o_ref[...] = sp.astype(o_ref.dtype)


def _fanout_forward(a2, x2, wa, wi, tcb, *, tm, tn, out_dtype):
    """a2:[Mp,Ka] x2:[Mp,Ki] wa:[Ka,Np] wi:[Ki,Np] tcb:[T,Np]
       -> softplus(a2@wa + x2@wi + tcb[row%T]) : [Mp, Np]"""
    m_pad, ka = a2.shape
    _, ki = x2.shape
    _, n_pad = wa.shape
    t = tcb.shape[0]

    in_itemsize = jnp.dtype(a2.dtype).itemsize
    out_itemsize = jnp.dtype(out_dtype).itemsize

    one_d = tn == n_pad
    if one_d:
        grid = (m_pad // tm,)
        in_specs = [
            pl.BlockSpec((tm, ka), lambda i: (i, 0)),      # activations rows
            pl.BlockSpec((tm, ki), lambda i: (i, 0)),      # input rows
            pl.BlockSpec((ka, n_pad), lambda i: (0, 0)),   # W_axon.T   (resident)
            pl.BlockSpec((ki, n_pad), lambda i: (0, 0)),   # W_input.T  (resident)
            pl.BlockSpec((t, n_pad), lambda i: (0, 0)),    # t_emb@W_time.T + b
        ]
        out_specs = pl.BlockSpec((tm, n_pad), lambda i: (i, 0))
        dim_sem = ("parallel",)
        w_width = n_pad
    else:
        grid = (m_pad // tm, n_pad // tn)
        in_specs = [
            pl.BlockSpec((tm, ka), lambda i, j: (i, 0)),
            pl.BlockSpec((tm, ki), lambda i, j: (i, 0)),
            pl.BlockSpec((ka, tn), lambda i, j: (0, j)),
            pl.BlockSpec((ki, tn), lambda i, j: (0, j)),
            pl.BlockSpec((t, tn), lambda i, j: (0, j)),
        ]
        out_specs = pl.BlockSpec((tm, tn), lambda i, j: (i, j))
        dim_sem = ("parallel", "parallel")
        w_width = tn

    # double-buffered row/output tiles + weight/time slabs
    # + Mosaic-internal f32 intermediates of the chained dot/add/softplus.
    vmem_est = (2 * tm * (ka + ki) * in_itemsize
                + 2 * (ka + ki) * w_width * in_itemsize
                + 2 * t * w_width * 4
                + 2 * tm * tn * out_itemsize
                + 3 * tm * tn * 4)
    vmem_limit = int(min(max(2 * vmem_est, 16 * 1024 * 1024), _scoped_vmem_cap()))

    return pl.pallas_call(
        _dendritic_fanout_kernel,
        out_shape=jax.ShapeDtypeStruct((m_pad, n_pad), out_dtype),
        grid=grid,
        in_specs=in_specs,
        out_specs=out_specs,
        compiler_params=pltpu.CompilerParams(
            dimension_semantics=dim_sem,
            vmem_limit_bytes=vmem_limit,
        ),
    )(a2, x2, wa, wi, tcb)


# ------------------------------ Module wrapper -----------------------------
class DendriticIntegrationFanoutNode:
    LANE = 128
    N_RESIDENT_MAX = 2048          # 1-D grid (resident weights) up to this width

    def __init__(self, num_neurons, branching_factors, time_representation_dim,
                 input_size, key):
        self.num_neurons = num_neurons
        self.branching_factors = list(branching_factors)
        self.num_nodes = num_neurons * prod(branching_factors)
        self.time_representation_dim = time_representation_dim
        self.input_size = input_size

        # lane-align the node dimension once (avoids masked vst.msk stores)
        self.n_pad = _round_up(self.num_nodes, self.LANE)

        k1, k2, k3, k4 = jax.random.split(key, 4)

        # nn.Linear-style init: U(-1/sqrt(fan_in), 1/sqrt(fan_in))
        def init_w(k, fan_in, fan_out):
            bound = 1.0 / (fan_in ** 0.5)
            return jax.random.uniform(k, (fan_out, fan_in), jnp.float32,
                                      minval=-bound, maxval=bound)

        self.W_axon = init_w(k1, num_neurons, self.num_nodes)      # [Nn, num_neurons]
        bound = 1.0 / (num_neurons ** 0.5)
        self.b_axon = jax.random.uniform(k2, (self.num_nodes,), jnp.float32,
                                         minval=-bound, maxval=bound)
        self.W_time = init_w(k3, time_representation_dim, self.num_nodes)
        self.W_input = init_w(k4, input_size, self.num_nodes)

        # pre-transposed, lane-padded parameter slabs (built once, not per call)
        pad = self.n_pad - self.num_nodes
        self.WA_T = jnp.pad(self.W_axon.T, ((0, 0), (0, pad)))     # [num_neurons, Np]
        self.WI_T = jnp.pad(self.W_input.T, ((0, 0), (0, pad)))    # [input_size,  Np]
        self.WT_T = jnp.pad(self.W_time.T, ((0, 0), (0, pad)))     # [time_dim,    Np]
        self.b_pad = jnp.pad(self.b_axon, (0, pad)).reshape(1, self.n_pad)

        self._weight_cache = {}    # compute_dtype -> (WA_T, WI_T) cast once

    # ----- helpers ---------------------------------------------------------
    def _weights(self, compute_dtype):
        dt = jnp.dtype(compute_dtype)
        if dt not in self._weight_cache:
            self._weight_cache[dt] = (self.WA_T.astype(dt), self.WI_T.astype(dt))
        return self._weight_cache[dt]

    def _pick_tiles(self, m, compute_dtype):
        # bf16 packs 2 rows/sublane -> TM multiple of 16; f32 -> 8.
        row_mult = 16 if jnp.dtype(compute_dtype).itemsize <= 2 else 8

        if self.n_pad <= self.N_RESIDENT_MAX:
            tn = self.n_pad                      # 1-D grid, resident weights
        else:
            tn = 512 if self.n_pad % 512 == 0 else \
                 (256 if self.n_pad % 256 == 0 else 128)

        # VMEM budget per (tm, tn) output tile: ~6 f32-equivalent live copies
        # (double-buffered out + internal f32 intermediates).
        cap = (12 * 1024 * 1024) // (6 * 4 * tn)
        cap = max(row_mult, (cap // row_mult) * row_mult)
        cap = min(cap, 1024)

        if m > 512:
            # >= 2 blocks along the parallel M axis so v7x uses both TCs
            want = _round_up(max((m + 1) // 2, row_mult), row_mult)
        else:
            want = _round_up(m, row_mult)
        tm = max(row_mult, min(want, cap))
        return tm, tn

    # ----- forward ---------------------------------------------------------
    def __call__(self, activations, t_embeddings_schedule, input_vector,
                 compute_dtype=jnp.float32, out_dtype=None):
        assert activations.shape[-1] == self.num_neurons
        assert (*activations.shape[:-1], self.input_size) == tuple(input_vector.shape)
        assert (activations.shape[-2], self.time_representation_dim) == \
            tuple(t_embeddings_schedule.shape)

        if out_dtype is None:
            out_dtype = compute_dtype            # bf16 compute => bf16 output stream

        lead = activations.shape[:-1]            # (..., T)
        m = int(prod(lead))

        a2 = activations.reshape(m, self.num_neurons).astype(compute_dtype)
        x2 = input_vector.reshape(m, self.input_size).astype(compute_dtype)

        # tiny [T, Np] time contribution with the axon bias folded in (f32,
        # additive / precision-sensitive; never materialized at [M, Np] in HBM)
        tcb = jnp.dot(t_embeddings_schedule.astype(jnp.float32), self.WT_T) + self.b_pad

        tm, tn = self._pick_tiles(m, compute_dtype)
        m_pad = _round_up(m, tm)
        if m_pad > m:
            a2 = jnp.pad(a2, ((0, m_pad - m), (0, 0)))
            x2 = jnp.pad(x2, ((0, m_pad - m), (0, 0)))

        wa, wi = self._weights(compute_dtype)
        out = _fanout_forward(a2, x2, wa, wi, tcb, tm=tm, tn=tn, out_dtype=out_dtype)

        # TODO(synk): keep downstream consumers on the padded layout to avoid
        # this extra read+write when it does not fuse.
        if m_pad > m or self.n_pad > self.num_nodes:
            out = out[:m, :self.num_nodes]
        return out.reshape(*lead, self.num_neurons, *self.branching_factors)


# --------------------------------- main ------------------------------------
if __name__ == "__main__":
    key = jax.random.PRNGKey(0)
    k_param, k_act, k_t, k_in = jax.random.split(key, 4)

    batch, T = 2, 8
    num_neurons = 16
    branching_factors = [2, 3]
    time_dim = 4
    input_size = 8

    module = DendriticIntegrationFanoutNode(
        num_neurons, branching_factors, time_dim, input_size, k_param)

    activations = jax.random.normal(k_act, (batch, T, num_neurons), jnp.float32)
    t_emb = jax.random.normal(k_t, (T, time_dim), jnp.float32)
    input_vec = jax.random.normal(k_in, (batch, T, input_size), jnp.float32)

    # f32 path (strict check against plain-JAX reference)
    out = jax.block_until_ready(module(activations, t_emb, input_vec))

    preact = (activations @ module.W_axon.T + module.b_axon
              + (t_emb @ module.W_time.T)[None]
              + input_vec @ module.W_input.T)
    ref = jax.nn.softplus(preact).reshape(
        batch, T, num_neurons, *branching_factors)
    assert out.shape == (batch, T, num_neurons, *branching_factors)
    assert jnp.allclose(out, ref, rtol=1e-5, atol=1e-5)

    # bf16 path: bf16 MXU feed + bf16 output stream (halved HBM traffic);
    # accumulation and softplus remain f32 inside the kernel.
    out_bf16 = jax.block_until_ready(
        module(activations, t_emb, input_vec, compute_dtype=jnp.bfloat16))
    assert out_bf16.shape == ref.shape
    assert out_bf16.dtype == jnp.bfloat16
    assert jnp.allclose(out_bf16.astype(jnp.float32), ref, rtol=1e-1, atol=1e-1)

    print("KERNEL_OK")
</pallas_src>

<mosaic_0001>
module attributes {stable_mosaic.version = 11 : i64} {
  func.func @_dendritic_fanout_kernel(%arg0: i32, %arg1: memref<16x16xf32, #tpu.memory_space<vmem>>, %arg2: memref<16x8xf32, #tpu.memory_space<vmem>>, %arg3: memref<16x128xf32, #tpu.memory_space<vmem>>, %arg4: memref<8x128xf32, #tpu.memory_space<vmem>>, %arg5: memref<8x128xf32, #tpu.memory_space<vmem>>, %arg6: memref<16x128xf32, #tpu.memory_space<vmem>>) attributes {dimension_semantics = [#tpu.dimension_semantics<parallel>], iteration_bounds = array<i64: 1>, scalar_prefetch = 0 : i64, scratch_operands = 0 : i64, tpu.core_type = #tpu.core_type<tc>, window_params = [{transform_indices = @transform_0, window_bounds = array<i64: 16, 16>}, {transform_indices = @transform_1, window_bounds = array<i64: 16, 8>}, {pipeline_mode = #tpu.pipeline_mode<synchronous>, transform_indices = @transform_2, window_bounds = array<i64: 16, 128>}, {pipeline_mode = #tpu.pipeline_mode<synchronous>, transform_indices = @transform_3, window_bounds = array<i64: 8, 128>}, {pipeline_mode = #tpu.pipeline_mode<synchronous>, transform_indices = @transform_4, window_bounds = array<i64: 8, 128>}, {transform_indices = @transform_5, window_bounds = array<i64: 16, 128>}]} {
    %c0 = arith.constant 0 : index
    %c0_0 = arith.constant 0 : index
    %0 = vector.load %arg1[%c0, %c0_0] : memref<16x16xf32, #tpu.memory_space<vmem>>, vector<16x16xf32>
    %c0_1 = arith.constant 0 : index
    %c0_2 = arith.constant 0 : index
    %1 = vector.load %arg3[%c0_1, %c0_2] : memref<16x128xf32, #tpu.memory_space<vmem>>, vector<16x128xf32>
    %cst = arith.constant dense<0.000000e+00> : vector<16x128xf32>
    %2 = tpu.matmul %0, %1, %cst {dimension_numbers = #tpu.dot_dimension_numbers<[1], [0], [0], [1], [0, 0, 1, 1], [], []>} : vector<16x16xf32>, vector<16x128xf32>, vector<16x128xf32> -> vector<16x128xf32>
    %c0_3 = arith.constant 0 : index
    %c0_4 = arith.constant 0 : index
    %3 = vector.load %arg2[%c0_3, %c0_4] : memref<16x8xf32, #tpu.memory_space<vmem>>, vector<16x8xf32>
    %c0_5 = arith.constant 0 : index
    %c0_6 = arith.constant 0 : index
    %4 = vector.load %arg4[%c0_5, %c0_6] : memref<8x128xf32, #tpu.memory_space<vmem>>, vector<8x128xf32>
    %cst_7 = arith.constant dense<0.000000e+00> : vector<16x128xf32>
    %5 = tpu.matmul %3, %4, %cst_7 {dimension_numbers = #tpu.dot_dimension_numbers<[1], [0], [0], [1], [0, 0, 1, 1], [], []>} : vector<16x8xf32>, vector<8x128xf32>, vector<16x128xf32> -> vector<16x128xf32>
    %6 = arith.addf %2, %5 : vector<16x128xf32>
    %c16_i32 = arith.constant 16 : i32
    %7 = arith.muli %arg0, %c16_i32 : i32
    %8 = tpu.iota {dimensions = array<i32: 0>} : vector<16x8xi32>
    %9 = vector.broadcast %7 : i32 to vector<16x8xi32>
    %10 = arith.addi %9, %8 : vector<16x8xi32>
    %11 = tpu.iota {dimensions = array<i32: 1>} : vector<16x8xi32>
    %c8_i32 = arith.constant 8 : i32
    %c0_i32 = arith.constant 0 : i32
    %12 = arith.cmpi eq, %c8_i32, %c0_i32 : i32
    %c1_i32 = arith.constant 1 : i32
    %13 = arith.select %12, %c1_i32, %c8_i32 : i32
    %14 = vector.broadcast %13 : i32 to vector<16x8xi32>
    %15 = arith.remsi %10, %14 : vector<16x8xi32>
    %c0_i32_8 = arith.constant 0 : i32
    %16 = vector.broadcast %c0_i32_8 : i32 to vector<16x8xi32>
    %17 = arith.cmpi ne, %15, %16 : vector<16x8xi32>
    %c0_i32_9 = arith.constant 0 : i32
    %18 = vector.broadcast %c0_i32_9 : i32 to vector<16x8xi32>
    %19 = arith.cmpi slt, %15, %18 : vector<16x8xi32>
    %c0_i32_10 = arith.constant 0 : i32
    %20 = arith.cmpi slt, %13, %c0_i32_10 : i32
    %21 = vector.broadcast %20 : i1 to vector<16x8xi1>
    %22 = vector.broadcast %21 : vector<16x8xi1> to vector<16x8xi1>
    %23 = arith.xori %19, %22 : vector<16x8xi1>
    %24 = arith.andi %23, %17 : vector<16x8xi1>
    %25 = vector.broadcast %13 : i32 to vector<16x8xi32>
    %26 = arith.addi %15, %25 : vector<16x8xi32>
    %27 = arith.select %24, %26, %15 : vector<16x8xi1>, vector<16x8xi32>
    %28 = arith.cmpi eq, %27, %11 : vector<16x8xi32>
    %29 = arith.extui %28 : vector<16x8xi1> to vector<16x8xi32>
    %30 = arith.sitofp %29 : vector<16x8xi32> to vector<16x8xf32>
    %c0_11 = arith.constant 0 : index
    %c0_12 = arith.constant 0 : index
    %31 = vector.load %arg5[%c0_11, %c0_12] : memref<8x128xf32, #tpu.memory_space<vmem>>, vector<8x128xf32>
    %cst_13 = arith.constant dense<0.000000e+00> : vector<16x128xf32>
    %32 = tpu.matmul %30, %31, %cst_13 {dimension_numbers = #tpu.dot_dimension_numbers<[1], [0], [0], [1], [0, 0, 1, 1], [], []>} : vector<16x8xf32>, vector<8x128xf32>, vector<16x128xf32> -> vector<16x128xf32>
    %33 = arith.addf %6, %32 : vector<16x128xf32>
    %cst_14 = arith.constant 0.000000e+00 : f32
    %34 = vector.broadcast %cst_14 : f32 to vector<16x128xf32>
    %35 = arith.maximumf %33, %34 : vector<16x128xf32>
    %36 = math.absf %33 : vector<16x128xf32>
    %cst_15 = arith.constant 0.000000e+00 : f32
    %37 = vector.broadcast %cst_15 : f32 to vector<16x128xf32>
    %38 = arith.subf %37, %36 : vector<16x128xf32>
    %39 = math.exp %38 : vector<16x128xf32>
    %40 = math.log1p %39 : vector<16x128xf32>
    %41 = arith.addf %35, %40 : vector<16x128xf32>
    %c0_16 = arith.constant 0 : index
    %c0_17 = arith.constant 0 : index
    %42 = vector.load %arg6[%c0_16, %c0_17] : memref<16x128xf32, #tpu.memory_space<vmem>>, vector<16x128xf32>
    tpu.vector_store %arg6[%c0_16, %c0_17], %41 {strides = array<i32>} : memref<16x128xf32, #tpu.memory_space<vmem>>, vector<16x128xf32>,
    return
  }
  func.func @transform_0(%arg0: i32) -> (i32, i32) {
    %c0_i32 = arith.constant 0 : i32
    %c0_i32_0 = arith.constant 0 : i32
    return %arg0, %c0_i32 : i32, i32
  }
  func.func @transform_1(%arg0: i32) -> (i32, i32) {
    %c0_i32 = arith.constant 0 : i32
    %c0_i32_0 = arith.constant 0 : i32
    return %arg0, %c0_i32 : i32, i32
  }
  func.func @transform_2(%arg0: i32) -> (i32, i32) {
    %c0_i32 = arith.constant 0 : i32
    %c0_i32_0 = arith.constant 0 : i32
    %c0_i32_1 = arith.constant 0 : i32
    return %c0_i32, %c0_i32_0 : i32, i32
  }
  func.func @transform_3(%arg0: i32) -> (i32, i32) {
    %c0_i32 = arith.constant 0 : i32
    %c0_i32_0 = arith.constant 0 : i32
    %c0_i32_1 = arith.constant 0 : i32
    return %c0_i32, %c0_i32_0 : i32, i32
  }
  func.func @transform_4(%arg0: i32) -> (i32, i32) {
    %c0_i32 = arith.constant 0 : i32
    %c0_i32_0 = arith.constant 0 : i32
    %c0_i32_1 = arith.constant 0 : i32
    return %c0_i32, %c0_i32_0 : i32, i32
  }
  func.func @transform_5(%arg0: i32) -> (i32, i32) {
    %c0_i32 = arith.constant 0 : i32
    %c0_i32_0 = arith.constant 0 : i32
    return %arg0, %c0_i32 : i32, i32
  }
}

</mosaic_0001>

<bundles_post_ra>
// kernel: tpu_custom_call.1
= control target key start
LH: loop header
LB: loop body
LE: loop exit
PB: predicated region body
PF: predicated region fallthrough
CT: control target
= control target key end

     0   :  { %10 = vsyncpa [#allocation3], 0  ;;  %s569_s0 = inlined_call_operand.vmem [shape: f32[16,16], index: 0, kind: input, shape index: {}]   ;;  %s570_s1 = inlined_call_operand.vmem [shape: f32[16,8], index: 1, kind: input, shape index: {}]   ;;  %s571_s2 = inlined_call_operand.hbm [shape: f32[16,128], index: 2, kind: input, shape index: {}]   ;;  %s572_s3 = inlined_call_operand.vmem [shape: f32[8,128], index: 3, kind: input, shape index: {}]   ;;  %s573_s4 = inlined_call_operand.vmem [shape: f32[8,128], index: 4, kind: input, shape index: {}]   ;;  %s574_s5 = inlined_call_operand.hbm [shape: f32[16,128], index: 5, kind: output, shape index: {}]  }
   0x1   :  { %11 = vsyncpa [#allocation4], 0  ;;  %s482_s18 = smov [#allocation2]   ;;  %s434_s22 = scalar_lea.hbm %s571_s2, 256 }
   0x2   :  { %s21_s19 = sshll.u32 %s482_s18, 4  ;;  %p435_p0 = scmp.ne.s32.totalorder %s571_s2, %s434_s22  ;;  %s22_s19 = int_to_ptr.vmem [resolvable:$true] %s21_s19 }
   0x3   :  { %p438_p1 = scmp.lt.u32.totalorder %s434_s22, %s571_s2 }
   0x5   :  { %p440_p2 = pnand %p438_p1, %p435_p0 }
   0x7   :  { %443 = shalt.err (!%p440_p2)
}
   0x8   :  { %s444_s27 = scalar_lea.vmem %s22_s19, 256  ;;  %p449_p4 = scmp.lt.s32.totalorder %s22_s19, %s22_s19 }
   0x9   :  { %p445_p3 = scmp.ne.s32.totalorder %s22_s19, %s444_s27  ;;  %p450_p5 = scmp.lt.s32.totalorder %s444_s27, %s444_s27 }
   0xb   :  { %p451_p6 = por %p450_p5, %p449_p4 }
   0xd   :  { %p452_p7 = pnand %p451_p6, %p445_p3 }
   0xf   :  { %455 = shalt.err (!%p452_p7)
}
  0x10   :  { %s483_s28 = smov 128   ;;  %s484_s29 = smov 8  }
  0x11   :  { %27 = dma.hbm_to_vmem [thread:$0]  %s571_s2, 256, %s22_s19, [#allocation3], %s483_s28, %s483_s28, %s484_s29  }
  0x12   :  { %478 = dma.done.wait [#allocation3], 256  }
  0x13   :  { %479 = vsyncadd [#allocation3], 4294967040  ;;  %v207_v0 = vlaneseq  ;;  %vm42_vm0 = vcmask 64512   ;;  %v41_v6 = vld [vmem:[%s572_s3] sm:$0xff]  ;;  %v38_v9 = vld [vmem:[#allocation2 + $0x8] sm:$0xff]  ;;  %vm124_vm3 = vcmask 130048  }
  0x14   :  { %v39_v7 = vld [vmem:[%s570_s1] sm:$0xff]  ;;  %396 = vmatprep.subr.mxu0 %v41_v6  ;;  %v40_v10 = vld [vmem:[%s570_s1 + $0x8] sm:$0xff]  ;;  %v485_v14 = vmov 0.0  }
  0x15   :  { %v208_v1 = vshrl.u32 %v207_v0, 7  ;;  %v214_v2 = vand.u32 127, %v207_v0  ;;  %v37_v8 = vld [vmem:[#allocation2] sm:$0xff]  ;;  %398 = vmatprep.mubr.msk.f32.mxu0 %vm42_vm0, %v39_v7  ;;  %397 = vmatpush3.msra.mxu0 %v41_v6  ;;  %v36_v17 = vld [vmem:[%s569_s0 + $0x8] sm:$0xff] }
  0x16   :  { %v245_v11 = vld [vmem:[%s573_s4] sm:$0xff]  ;;  %v413_v12 = vpack.c.bf16 %v38_v9, %v37_v8  ;;  %399 = vmatmul.mubr.msk.f32.vlgmr.msra.gmra.mrb[0].mxu0 %vm42_vm0, %v40_v10 }
  0x17   :  { %v209_v3 = vadd.s32 8, %v208_v1  ;;  %v219_v4 = vand.u32 7, %v208_v1  ;;  %v35_v13 = vld [vmem:[%s569_s0] sm:$0xff]  ;;  %408 = vmatprep.subr.mxu0 %v245_v11  ;;  %s486_s0 = smov [#allocation5]  }
  0x18   :  { %414 = vmatprep.subr.bf16.mxu1 %v413_v12  ;;  %409 = vmatpush3.msra.mxu0 %v245_v11  ;;  %s366_s15 = sshll.u32 %s486_s0, 4  ;;  %s367_s15 = int_to_ptr.vmem [resolvable:$true] %s366_s15 }
  0x19   :  { %v226_v5 = vand.u32 7, %v209_v3  ;;  %vm239_vm1 = vcmp.eq.s32.totalorder %v219_v4, %v214_v2  ;;  %416 = vmatpush3.bf16.msra.mxu1 %v413_v12  ;;  %405 = vmatprep.mubr.msk.f32.mxu1 %vm124_vm3, %v35_v13  ;;  %s456_s16 = scalar_lea.vmem %s367_s15, 256  ;;  %p461_p9 = scmp.lt.s32.totalorder %s367_s15, %s367_s15 }
  0x1a   :  { %v382_v15 = vsel %vm239_vm1, 1.0, %v485_v14  ;;  %p457_p8 = scmp.ne.s32.totalorder %s367_s15, %s456_s16  ;;  %p462_p10 = scmp.lt.s32.totalorder %s456_s16, %s456_s16 }
  0x1b   :  { %vm240_vm2 = vcmp.eq.s32.totalorder %v226_v5, %v214_v2  ;;  %410 = vmatprep.mubr.msk.f32.mxu0 %vm42_vm0, %v382_v15 }
  0x1c   :  { %v383_v16 = vsel %vm240_vm2, 1.0, %v485_v14  ;;  %406 = vmatmul.mubr.msk.f32.vlgmr.msra.gmra.mrb[0].mxu1 %vm124_vm3, %v36_v17  ;;  %p463_p11 = por %p462_p10, %p461_p9 }
  0x1d   :  { %411 = vmatmul.mubr.msk.f32.vlgmr.msra.gmra.mrb[2].mxu0 %vm42_vm0, %v383_v16 }
  0x1e   :  { %p464_p12 = pnand %p463_p11, %p457_p8 }
  0xe9   :  { %v400_v18 = vpop.f32.mrb[0].mxu0 }
  0xea   :  { %v115_v19 = vpop.f32.mrb[1].mxu0 }
  0xef   :  { %v407_v21 = vpop.f32.mrb[0].mxu1 }
  0xf0   :  { %v412_v20 = vpop.f32.mrb[2].mxu0  ;;  %v203_v23 = vadd.f32 %v407_v21, %v400_v18  ;;  %v197_v24 = vpop.f32.mrb[1].mxu1 }
  0xf1   :  { %v318_v22 = vpop.f32.mrb[3].mxu0  ;;  %v198_v25 = vadd.f32 %v197_v24, %v115_v19 }
  0xf2   :  { %v328_v26 = vadd.f32 %v412_v20, %v203_v23 }
  0xf3   :  { %v327_v27 = vadd.f32 %v318_v22, %v198_v25 }
  0xf4   :  { %v332_v28 = vand.u32 2147483647, %v328_v26  ;;  %v330_v48 = vmax.f32 %v328_v26, 0.0 }
  0xf5   :  { %v331_v29 = vand.u32 2147483647, %v327_v27  ;;  %v329_v52 = vmax.f32 %v327_v27, 0.0 }
  0xf6   :  { %v334_v30 = vsub.f32 0.0, %v332_v28 }
  0xf7   :  { %v333_v31 = vsub.f32 0.0, %v331_v29 }
  0xf8   :  { %v337_v32 = vmul.f32 1.442695, %v334_v30 }
  0xf9   :  { %v335_v33 = vmul.f32 1.442695, %v333_v31 }
  0xfa   :  { %426 = vpow2.f32 %v337_v32 }
  0xfb   :  { %428 = vpow2.f32 %v335_v33 }
 0x104   :  { %v427_v34 = vpop.eup %426 }
 0x105   :  { %v429_v35 = vpop.eup %428  ;;  %v348_v36 = vadd.f32 1.0, %v427_v34  ;;  %v351_v38 = vmul.f32 -0.5, %v427_v34  ;;  %v354_v41 = vand.u32 2147483647, %v427_v34 }
 0x106   :  { %v339_v37 = vadd.f32 1.0, %v429_v35  ;;  %v342_v39 = vmul.f32 -0.5, %v429_v35  ;;  %v345_v43 = vand.u32 2147483647, %v429_v35 }
 0x107   :  { %430 = vlog2.f32 %v348_v36  ;;  %v352_v40 = vadd.f32 1.0, %v351_v38  ;;  %vm355_vm4 = vcmp.lt.f32.partialorder %v354_v41, 0.0004427343 }
 0x108   :  { %432 = vlog2.f32 %v339_v37  ;;  %v343_v42 = vadd.f32 1.0, %v342_v39  ;;  %vm346_vm5 = vcmp.lt.f32.partialorder %v345_v43, 0.0004427343 }
 0x109   :  { %v353_v47 = vmul.f32 %v427_v34, %v352_v40 }
 0x10a   :  { %v344_v50 = vmul.f32 %v429_v35, %v343_v42 }
 0x111   :  { %v431_v44 = vpop.eup %430 }
 0x112   :  { %v433_v45 = vpop.eup %432  ;;  %v350_v46 = vmul.f32 0.6931472, %v431_v44 }
 0x113   :  { %v341_v49 = vmul.f32 0.6931472, %v433_v45 }
 0x114   :  { %v356_v51 = vsel %vm355_vm4, %v353_v47, %v350_v46 }
 0x115   :  { %v358_v53 = vadd.f32 %v356_v51, %v330_v48  ;;  %v347_v54 = vsel %vm346_vm5, %v344_v50, %v341_v49 }
 0x116   :  { %v357_v55 = vadd.f32 %v347_v54, %v329_v52 }
 0x117   :  { %360 = vst [vmem:[#allocation5 + $0x8] sm:$0xff] %v358_v53 }
 0x118   :  { %359 = vst [vmem:[#allocation5] sm:$0xff] %v357_v55 }
 0x119   :  { %467 = shalt.err (!%p464_p12)
}
 0x11a   :  { %s468_s19 = scalar_lea.hbm %s574_s5, 256 }
 0x11b   :  { %p469_p13 = scmp.ne.s32.totalorder %s574_s5, %s468_s19  ;;  %p472_p0 = scmp.lt.u32.totalorder %s468_s19, %s574_s5 }
 0x11d   :  { %p474_p1 = pnand %p472_p0, %p469_p13 }
 0x11f   :  { %477 = shalt.err (!%p474_p1)
}
 0x120   :  { %372 = dma.vmem_to_hbm [thread:$0]  %s367_s15, 256, %s574_s5, [#allocation4], %s483_s28, %s483_s28, %s484_s29  }
 0x121   :  { %480 = dma.done.wait [#allocation4], 256  }
 0x122   :  { %481 = vsyncadd [#allocation4], 4294967040 }
 0x123   :  { %376 = vsyncpa [#allocation3], 1 }
 0x124   :  { %377 = vsyncpa [#allocation4], 1 }

</bundles_post_ra>
